<compile_context>
chip_gen: v5e
topology: v5e:2x2
jax: 0.10.0
libtpu: 0.0.40
codegen_flags: <defaults>
</compile_context>

<pallas_src>
import functools

import numpy as np
import jax
import jax.numpy as jnp
from jax.experimental import pallas as pl
from jax.experimental.pallas import tpu as pltpu


def _gfp_kernel(x_ref, w_ref, b_ref, o_ref):
    # Works for both orientations:
    #   row-major:      x (TB, 1) * w (1, E)  + b (1, E)  -> o (TB, E)
    #   batch-on-lanes: x (1, TB) * w (E, 1)  + b (E, 1)  -> o (E, TB)
    # One VPU broadcast-FMA, one EUP sin, one full-width store.
    o_ref[...] = jnp.sin(x_ref[...] * w_ref[...] + b_ref[...])


@functools.partial(jax.jit, static_argnames=("tb",))
def _gfp_forward(x, w_full, bias, tb=4096):
    B = x.shape[0]
    E = w_full.shape[0]  # embed_dim = 2 * H
    x = x.astype(jnp.float32)

    # Keep the double-buffered output tile well under v5e's 16 MiB scoped VMEM.
    vmem_budget = 8 * 1024 * 1024
    max_rows = max(8, vmem_budget // (2 * E * 4))

    cost = pl.CostEstimate(
        flops=2 * B * E,            # mul + add per output element
        transcendentals=B * E,      # single sin per output element
        bytes_accessed=(B + 2 * E) * 4 + B * E * 4,
    )
    cparams = pltpu.CompilerParams(dimension_semantics=("parallel",))

    if E < 128:
        # Output narrower than a vreg lane row: put the batch on lanes so every
        # load/compute/store is lane-dense. Transpose once in the wrapper.
        if B <= 128:
            TB = B                                      # single full-extent block
        else:
            half = max(128, ((B // 2) // 128) * 128)    # >= 2 blocks (v7x: 2 TCs)
            TB = max(128, (min(tb, half, max_rows) // 128) * 128)
        grid = (pl.cdiv(B, TB),)
        out = pl.pallas_call(
            _gfp_kernel,
            out_shape=jax.ShapeDtypeStruct((E, B), jnp.float32),
            grid_spec=pl.GridSpec(
                grid=grid,
                in_specs=[
                    pl.BlockSpec((1, TB), lambda i: (0, i)),   # x row (lane-dense)
                    pl.BlockSpec((E, 1), lambda i: (0, 0)),    # folded W column
                    pl.BlockSpec((E, 1), lambda i: (0, 0)),    # phase-bias column
                ],
                out_specs=pl.BlockSpec((E, TB), lambda i: (0, i)),
            ),
            compiler_params=cparams,
            cost_estimate=cost,
        )(x.reshape(1, B), w_full.reshape(E, 1), bias.reshape(E, 1))
        return out.T                                    # (B, E)

    # Wide embed_dim: batch on sublanes, full-width lane-dense rows.
    if B < 16:
        TB = B                                          # single full-extent block
    else:
        half = max(8, ((B // 2) // 8) * 8)              # >= 2 blocks (v7x: 2 TCs)
        TB = max(8, (min(tb, half, max_rows) // 8) * 8)
    grid = (pl.cdiv(B, TB),)
    out = pl.pallas_call(
        _gfp_kernel,
        out_shape=jax.ShapeDtypeStruct((B, E), jnp.float32),
        grid_spec=pl.GridSpec(
            grid=grid,
            in_specs=[
                pl.BlockSpec((TB, 1), lambda i: (i, 0)),       # batch tile of x
                pl.BlockSpec((1, E), lambda i: (0, 0)),        # folded W row
                pl.BlockSpec((1, E), lambda i: (0, 0)),        # phase-bias row
            ],
            out_specs=pl.BlockSpec((TB, E), lambda i: (i, 0)),
        ),
        compiler_params=cparams,
        cost_estimate=cost,
    )(x.reshape(B, 1), w_full.reshape(1, E), bias.reshape(1, E))
    return out


class GaussianFourierProjection:
    """Pallas-TPU port of the PyTorch module (non-trainable random features)."""

    def __init__(self, embed_dim, scale=30.0, *, key=None, W=None):
        if W is None:
            W = jax.random.normal(key, (embed_dim // 2,), dtype=jnp.float32) * scale
        self.W = jnp.asarray(W, jnp.float32)
        H = self.W.shape[0]
        # Folded once at parameter-construction time:
        #   cos(t) = sin(t + pi/2)  ->  out = sin(x * w_full + bias)
        self.w_full = jnp.concatenate([self.W, self.W]) * jnp.float32(2.0 * np.pi)
        self.bias = jnp.concatenate(
            [jnp.zeros((H,), jnp.float32),
             jnp.full((H,), 0.5 * np.pi, jnp.float32)])

    def __call__(self, x, tb=4096):
        return _gfp_forward(x, self.w_full, self.bias, tb=tb)


def reference(x, W):
    """Faithful (PyTorch-order) reference: sin||cos of x * W * 2*pi."""
    x_proj = x[:, None] * W[None, :] * 2.0 * np.pi
    return jnp.concatenate([jnp.sin(x_proj), jnp.cos(x_proj)], axis=-1)


if __name__ == "__main__":
    key = jax.random.PRNGKey(0)
    kw, kw2, kx, kx2, kx3 = jax.random.split(key, 5)

    # Tolerance note: phase args reach O(500) rad, where 1 f32 ULP of the
    # argument is ~6e-5, so reassociation (2*pi fold, cos->sin+pi/2) legitimately
    # moves sin/cos by up to a few 1e-4.  2e-3 on [-1,1] outputs still catches
    # any real layout / indexing / ordering bug.
    ATOL, RTOL = 2e-3, 1e-3

    # 1) Module-default small embed_dim (batch-on-lanes path, single block).
    embed_dim, scale, batch = 32, 30.0, 8
    gfp = GaussianFourierProjection(embed_dim, scale, key=kw)
    x = jax.random.uniform(kx, (batch,), dtype=jnp.float32)
    out = jax.block_until_ready(gfp(x))
    ref = reference(x, gfp.W)
    assert out.shape == (batch, embed_dim), out.shape
    assert jnp.allclose(out, ref, atol=ATOL, rtol=RTOL), "mismatch vs reference"

    # 2) Wide embed_dim (lane-dense row path) with a multi-block pipelined grid.
    gfp2 = GaussianFourierProjection(128, scale, key=kw2)
    xb = jax.random.uniform(kx2, (64,), dtype=jnp.float32)
    out2 = jax.block_until_ready(gfp2(xb, tb=16))
    ref2 = reference(xb, gfp2.W)
    assert out2.shape == (64, 128), out2.shape
    assert jnp.allclose(out2, ref2, atol=ATOL, rtol=RTOL), "wide-embed mismatch"

    # 3) Batch-on-lanes path with multiple 128-wide lane tiles.
    xc = jax.random.uniform(kx3, (512,), dtype=jnp.float32)
    out3 = jax.block_until_ready(gfp(xc))
    ref3 = reference(xc, gfp.W)
    assert out3.shape == (512, embed_dim), out3.shape
    assert jnp.allclose(out3, ref3, atol=ATOL, rtol=RTOL), "tiled mismatch"

    print("KERNEL_OK")
</pallas_src>

<mosaic_0001>
module attributes {stable_mosaic.version = 11 : i64} {
  func.func @_gfp_kernel(%arg0: i32, %arg1: memref<1x8xf32, #tpu.memory_space<vmem>>, %arg2: memref<32x1xf32, #tpu.memory_space<vmem>>, %arg3: memref<32x1xf32, #tpu.memory_space<vmem>>, %arg4: memref<32x8xf32, #tpu.memory_space<vmem>>) attributes {dimension_semantics = [#tpu.dimension_semantics<parallel>], iteration_bounds = array<i64: 1>, scalar_prefetch = 0 : i64, scratch_operands = 0 : i64, tpu.core_type = #tpu.core_type<tc>, window_params = [{transform_indices = @transform_0, window_bounds = array<i64: 1, 8>}, {pipeline_mode = #tpu.pipeline_mode<synchronous>, transform_indices = @transform_1, window_bounds = array<i64: 32, 1>}, {pipeline_mode = #tpu.pipeline_mode<synchronous>, transform_indices = @transform_2, window_bounds = array<i64: 32, 1>}, {transform_indices = @transform_3, window_bounds = array<i64: 32, 8>}]} {
    %c0 = arith.constant 0 : index
    %c0_0 = arith.constant 0 : index
    %0 = vector.load %arg1[%c0, %c0_0] : memref<1x8xf32, #tpu.memory_space<vmem>>, vector<1x8xf32>
    %c0_1 = arith.constant 0 : index
    %c0_2 = arith.constant 0 : index
    %1 = vector.load %arg2[%c0_1, %c0_2] : memref<32x1xf32, #tpu.memory_space<vmem>>, vector<32x1xf32>
    %2 = vector.broadcast %0 : vector<1x8xf32> to vector<32x8xf32>
    %3 = vector.broadcast %1 : vector<32x1xf32> to vector<32x8xf32>
    %4 = arith.mulf %2, %3 : vector<32x8xf32>
    %c0_3 = arith.constant 0 : index
    %c0_4 = arith.constant 0 : index
    %5 = vector.load %arg3[%c0_3, %c0_4] : memref<32x1xf32, #tpu.memory_space<vmem>>, vector<32x1xf32>
    %6 = vector.broadcast %5 : vector<32x1xf32> to vector<32x8xf32>
    %7 = arith.addf %4, %6 : vector<32x8xf32>
    %8 = math.sin %7 : vector<32x8xf32>
    %c0_5 = arith.constant 0 : index
    %c0_6 = arith.constant 0 : index
    %9 = vector.load %arg4[%c0_5, %c0_6] : memref<32x8xf32, #tpu.memory_space<vmem>>, vector<32x8xf32>
    tpu.vector_store %arg4[%c0_5, %c0_6], %8 {strides = array<i32>} : memref<32x8xf32, #tpu.memory_space<vmem>>, vector<32x8xf32>,
    return
  }
  func.func @transform_0(%arg0: i32) -> (i32, i32) {
    %c0_i32 = arith.constant 0 : i32
    %c0_i32_0 = arith.constant 0 : i32
    return %c0_i32, %arg0 : i32, i32
  }
  func.func @transform_1(%arg0: i32) -> (i32, i32) {
    %c0_i32 = arith.constant 0 : i32
    %c0_i32_0 = arith.constant 0 : i32
    %c0_i32_1 = arith.constant 0 : i32
    return %c0_i32, %c0_i32_0 : i32, i32
  }
  func.func @transform_2(%arg0: i32) -> (i32, i32) {
    %c0_i32 = arith.constant 0 : i32
    %c0_i32_0 = arith.constant 0 : i32
    %c0_i32_1 = arith.constant 0 : i32
    return %c0_i32, %c0_i32_0 : i32, i32
  }
  func.func @transform_3(%arg0: i32) -> (i32, i32) {
    %c0_i32 = arith.constant 0 : i32
    %c0_i32_0 = arith.constant 0 : i32
    return %c0_i32, %arg0 : i32, i32
  }
}

</mosaic_0001>

<bundles_post_ra>
// kernel: _gfp_forward.1
= control target key start
LH: loop header
LB: loop body
LE: loop exit
PB: predicated region body
PF: predicated region fallthrough
CT: control target
= control target key end

     0   :  { %v726_v0 = vmov 0   ;;  %v727_v36 = vmov 683565275   ;;  %v728_v38 = vmov 2475754826   ;;  %s1178_s1 = inlined_call_operand.vmem [shape: f32[32,1], index: 1, kind: input, shape index: {}]   ;;  %s1179_s2 = inlined_call_operand.vmem [shape: f32[32,1], index: 2, kind: input, shape index: {}]   ;;  %s1180_s0 = inlined_call_operand.vmem [shape: f32[1,8], index: 0, kind: input, shape index: {}]   ;;  %s1181_s3 = inlined_call_operand.vmem [shape: f32[32,8], index: 3, kind: output, shape index: {}]  }
   0x1   :  { %723 = vset.pattern.permute.xlu1 %v726_v0  ;;  %722 = vset.pattern.permute.xlu0 %v726_v0  ;;  %v17_v1 = vld [vmem:[%s1178_s1 + $0x10] sm:$0xff]  ;;  %v15_v2 = vld [vmem:[%s1178_s1] sm:$0xff]  ;;  %v18_v4 = vld [vmem:[%s1178_s1 + $0x18] sm:$0xff]  ;;  %v729_v42 = vmov 2131351028  }
   0x2   :  { %34 = vperm.xlu1 %723, %v17_v1   ;;  %24 = vperm.xlu0 %722, %v15_v2   ;;  %v46_v3 = vld [vmem:[%s1179_s2] sm:$0xff]  ;;  %v16_v5 = vld [vmem:[%s1178_s1 + $0x8] sm:$0xff]  ;;  %v49_v7 = vld [vmem:[%s1179_s2 + $0x18] sm:$0xff]  ;;  %v730_v45 = vmov 2102212464  }
   0x3   :  { %724 = vset.pattern.permute.xlu2 %v726_v0  ;;  %v47_v6 = vld [vmem:[%s1179_s2 + $0x8] sm:$0xff]  ;;  %v48_v8 = vld [vmem:[%s1179_s2 + $0x10] sm:$0xff]  ;;  %v783_v9 = vld [vmem:[%s1180_s0] ss:$0 sm:$0xff]  ;;  %v731_v48 = vmov 920167782  }
   0x4   :  { %52 = vperm.xlu2 %724, %v46_v3   ;;  %v732_v51 = vmov 1326507024  }
   0xa   :  { %39 = vperm.xlu1 %723, %v18_v4   ;;  %29 = vperm.xlu0 %722, %v16_v5  }
   0xc   :  { %57 = vperm.xlu2 %724, %v47_v6  }
  0x12   :  { %67 = vperm.xlu1 %723, %v49_v7   ;;  %62 = vperm.xlu0 %722, %v48_v8  }
  0x5e   :  { %v53_v10 = vpop.permute.xlu2 %52 }
  0x66   :  { %v58_v22 = vpop.permute.xlu2 %57 }
  0x74   :  { %v25_v11 = vpop.permute.xlu0 %24  ;;  %v799_v29 = vpop.permute.xlu1 %34 }
  0x75   :  { %v42_v12 = vmul.f32 %v783_v9, %v25_v11 }
  0x77   :  { %v786_v13 = vadd.f32 %v53_v10, %v42_v12 }
  0x79   :  { %v74_v14 = vand.u32 2147483647, %v786_v13  ;;  %v77_v15 = vand.u32 2139095040, %v786_v13 }
  0x7b   :  { %v78_v16 = vshrl.u32 %v77_v15, 23  ;;  %v81_v17 = vand.u32 8388607, %v74_v14 }
  0x7c   :  { %v30_v18 = vpop.permute.xlu0 %29  ;;  %v40_v6 = vpop.permute.xlu1 %39 }
  0x7d   :  { %v703_v19 = vadd.s32 4294967169, %v78_v16  ;;  %v82_v20 = vor.u32 8388608, %v81_v17  ;;  %v43_v21 = vmul.f32 %v783_v9, %v30_v18  ;;  %v45_v17 = vmul.f32 %v783_v9, %v40_v6 }
  0x7f   :  { %v84_v23 = vadd.s32 1, %v703_v19  ;;  %v793_v24 = vadd.f32 %v58_v22, %v43_v21  ;;  %v795_v25 = vshll.u32 %v82_v20, 8 }
  0x81   :  { %vm85_vm0 = vcmp.gt.s32.totalorder %v84_v23, 0  ;;  %v229_v27 = vand.u32 2147483647, %v793_v24  ;;  %v232_v28 = vand.u32 2139095040, %v793_v24  ;;  %v123_v32 = vand.u32 65535, %v795_v25 }
  0x82   :  { %v86_v26 = vsel %vm85_vm0, %v84_v23, 0  ;;  %v124_v33 = vshrl.u32 %v795_v25, 16 }
  0x83   :  { %v88_v30 = vand.u32 31, %v86_v26  ;;  %v233_v34 = vshrl.u32 %v232_v28, 23  ;;  %v87_v35 = vshrl.u32 %v86_v26, 5  ;;  %v807_v40 = vand.u32 8388607, %v229_v27 }
  0x84   :  { %v68_v6 = vpop.permute.xlu1 %67 }
  0x85   :  { %v89_v31 = vsub.s32 32, %v88_v30  ;;  %v91_v37 = vshll.u32 %v727_v36, %v88_v30  ;;  %v94_v39 = vshll.u32 %v728_v38, %v88_v30  ;;  %v97_v44 = vshll.u32 %v729_v42, %v88_v30 }
  0x86   :  { %v100_v47 = vshll.u32 %v730_v45, %v88_v30  ;;  %v103_v50 = vshll.u32 %v731_v48, %v88_v30  ;;  %v706_v56 = vadd.s32 4294967169, %v233_v34  ;;  %vm106_vm1 = vcmp.lt.s32.totalorder %v87_v35, 1 }
  0x87   :  { %v92_v41 = vshrl.u32 %v728_v38, %v89_v31  ;;  %v95_v43 = vshrl.u32 %v729_v42, %v89_v31  ;;  %v98_v46 = vshrl.u32 %v730_v45, %v89_v31  ;;  %v101_v49 = vshrl.u32 %v731_v48, %v89_v31 }
  0x88   :  { %v104_v52 = vshrl.u32 %v732_v51, %v89_v31  ;;  %vm109_vm2 = vcmp.lt.s32.totalorder %v87_v35, 4  ;;  %v90_v59 = vshrl.u32 %v727_v36, %v89_v31  ;;  %vm108_vm3 = vcmp.lt.s32.totalorder %v87_v35, 3 }
  0x89   :  { %v93_v53 = vor.u32 %v92_v41, %v91_v37  ;;  %v96_v54 = vor.u32 %v95_v43, %v94_v39  ;;  %v99_v55 = vor.u32 %v98_v46, %v97_v44  ;;  %v102_v57 = vor.u32 %v101_v49, %v100_v47 }
  0x8a   :  { %v105_v58 = vor.u32 %v104_v52, %v103_v50  ;;  %v239_v2 = vadd.s32 1, %v706_v56  ;;  %vm107_vm4 = vcmp.lt.s32.totalorder %v87_v35, 2  ;;  %v237_v18 = vor.u32 8388608, %v807_v40 }
  0x8b   :  { %v111_v60 = vsel %vm109_vm2, %v99_v55, 2102212464  ;;  %v114_v61 = vsel %vm106_vm1, %v93_v53, %v96_v54  ;;  %v118_v62 = vsel %vm106_vm1, %v96_v54, %v99_v55  ;;  %v115_v63 = vsel %vm109_vm2, %v102_v57, 920167782 }
  0x8c   :  { %v119_v1 = vsel %vm109_vm2, %v105_v58, 1326507024  ;;  %v110_v3 = vsel %vm106_vm1, %v90_v59, %v93_v53  ;;  %v116_v4 = vsel %vm108_vm3, %v99_v55, %v115_v63  ;;  %v112_v7 = vsel %vm108_vm3, %v96_v54, %v111_v60 }
  0x8d   :  { %v120_v5 = vsel %vm108_vm3, %v102_v57, %v119_v1  ;;  %v117_v8 = vsel %vm107_vm4, %v114_v61, %v116_v4  ;;  %vm240_vm5 = vcmp.gt.s32.totalorder %v239_v2, 0  ;;  %v820_v19 = vsel %vm107_vm4, %v110_v3, %v112_v7 }
  0x8e   :  { %v121_v10 = vsel %vm107_vm4, %v118_v62, %v120_v5  ;;  %v147_v15 = vand.u32 65535, %v117_v8  ;;  %v148_v16 = vshrl.u32 %v117_v8, 16  ;;  %v241_v22 = vsel %vm240_vm5, %v239_v2, 0 }
  0x8f   :  { %v125_v11 = vand.u32 65535, %v121_v10  ;;  %v126_v12 = vshrl.u32 %v121_v10, 16  ;;  %v243_v47 = vand.u32 31, %v241_v22  ;;  %v825_v56 = vshrl.u32 %v241_v22, 5 }
  0x90   :  { %v150_v28 = vmul.u32 %v148_v16, %v123_v32  ;;  %v151_v30 = vmul.u32 %v147_v15, %v124_v33  ;;  %v149_v35 = vmul.u32 %v147_v15, %v123_v32  ;;  %v152_v37 = vmul.u32 %v148_v16, %v124_v33 }
  0x91   :  { %v128_v20 = vmul.u32 %v126_v12, %v123_v32  ;;  %v129_v21 = vmul.u32 %v125_v11, %v124_v33  ;;  %v127_v23 = vmul.u32 %v125_v11, %v123_v32  ;;  %v130_v26 = vmul.u32 %v126_v12, %v124_v33 }
  0x92   :  { %v153_v43 = vshll.u32 %v150_v28, 16  ;;  %v154_v44 = vshrl.u32 %v150_v28, 16  ;;  %v155_v40 = vshll.u32 %v151_v30, 16  ;;  %v156_v50 = vshrl.u32 %v151_v30, 16 }
  0x93   :  { %v131_v31 = vshll.u32 %v128_v20, 16  ;;  %v132_v34 = vshrl.u32 %v128_v20, 16  ;;  %v133_v39 = vshll.u32 %v129_v21, 16  ;;  %v134_v41 = vshrl.u32 %v129_v21, 16 }
  0x94   :  { %vm157_vm7 = vc.u32 %v149_v35, %v153_v43  ;;  %v159_v52 = vadd.s32 %v153_v43, %v149_v35  ;;  %v244_v55 = vsub.s32 32, %v243_v47  ;;  %v246_v60 = vshll.u32 %v727_v36, %v243_v47 }
  0x95   :  { %vm135_vm6 = vc.u32 %v127_v23, %v131_v31  ;;  %v137_v46 = vadd.s32 %v131_v31, %v127_v23  ;;  %v158_v54 = vsel %vm157_vm7, 1, %v726_v0  ;;  %v249_v63 = vshll.u32 %v728_v38, %v243_v47 }
  0x96   :  { %v136_v49 = vsel %vm135_vm6, 1, %v726_v0  ;;  %v160_v33 = vadd.s32 %v158_v54, %v152_v37  ;;  %vm161_vm9 = vc.u32 %v159_v52, %v155_v40  ;;  %v828_v59 = vadd.s32 %v159_v52, %v155_v40 }
  0x97   :  { %v138_v53 = vadd.s32 %v136_v49, %v130_v26  ;;  %vm139_vm8 = vc.u32 %v137_v46, %v133_v39  ;;  %v162_v58 = vsel %vm161_vm9, 1, %v726_v0  ;;  %v247_v62 = vshrl.u32 %v728_v38, %v244_v55 }
  0x98   :  { %v140_v32 = vsel %vm139_vm8, 1, %v726_v0  ;;  %v164_v61 = vadd.s32 %v162_v58, %v160_v33  ;;  %v250_v1 = vshrl.u32 %v729_v42, %v244_v55  ;;  %v252_v3 = vshll.u32 %v729_v42, %v243_v47 }
  0x99   :  { %v142_v57 = vadd.s32 %v140_v32, %v138_v53  ;;  %v253_v4 = vshrl.u32 %v730_v45, %v244_v55  ;;  %v255_v5 = vshll.u32 %v730_v45, %v243_v47  ;;  %v837_v8 = vor.u32 %v247_v62, %v246_v60 }
  0x9a   :  { %v165_v7 = vadd.s32 %v164_v61, %v154_v44  ;;  %v839_v10 = vor.u32 %v250_v1, %v249_v63  ;;  %v256_v11 = vshrl.u32 %v731_v48, %v244_v55  ;;  %v258_v16 = vshll.u32 %v731_v48, %v243_v47 }
  0x9b   :  { %v143_v2 = vadd.s32 %v142_v57, %v132_v34  ;;  %v254_v15 = vor.u32 %v253_v4, %v252_v3  ;;  %v259_v20 = vshrl.u32 %v732_v51, %v244_v55  ;;  %v846_v23 = vadd.f32 %v68_v6, %v45_v17 }
  0x9c   :  { %v166_v21 = vadd.s32 %v165_v7, %v156_v50  ;;  %v257_v22 = vor.u32 %v256_v11, %v255_v5  ;;  %vm261_vm11 = vcmp.lt.s32.totalorder %v825_v56, 1  ;;  %v851_v28 = vshll.u32 %v237_v18, 8 }
  0x9d   :  { %v842_v12 = vadd.s32 %v143_v2, %v134_v41  ;;  %v260_v26 = vor.u32 %v259_v20, %v258_v16  ;;  %v167_v30 = vmul.u32 %v795_v25, %v820_v19  ;;  %vm264_vm12 = vcmp.lt.s32.totalorder %v825_v56, 4 }
  0x9e   :  { %v170_v31 = vadd.s32 1, %v166_v21  ;;  %v269_v17 = vsel %vm261_vm11, %v837_v8, %v839_v10  ;;  %vm263_vm13 = vcmp.lt.s32.totalorder %v825_v56, 3  ;;  %v270_v34 = vsel %vm264_vm12, %v257_v22, 920167782 }
  0x9f   :  { %vm169_vm10 = vc.u32 %v842_v12, %v828_v59  ;;  %v273_v18 = vsel %vm261_vm11, %v839_v10, %v254_v15  ;;  %v274_v25 = vsel %vm264_vm12, %v260_v26, 1326507024  ;;  %vm262_vm14 = vcmp.lt.s32.totalorder %v825_v56, 2 }
  0xa0   :  { %v171_v19 = vsel %vm169_vm10, %v170_v31, %v166_v21  ;;  %v271_v35 = vsel %vm263_vm13, %v254_v15, %v270_v34  ;;  %v275_v37 = vsel %vm263_vm13, %v257_v22, %v274_v25  ;;  %v278_v44 = vand.u32 65535, %v851_v28 }
  0xa1   :  { %v172_v39 = vadd.s32 %v171_v19, %v167_v30  ;;  %v272_v41 = vsel %vm262_vm14, %v269_v17, %v271_v35  ;;  %v276_v43 = vsel %vm262_vm14, %v273_v18, %v275_v37  ;;  %v279_v46 = vshrl.u32 %v851_v28, 16 }
  0xa2   :  { %v280_v40 = vand.u32 65535, %v276_v43  ;;  %v281_v47 = vshrl.u32 %v276_v43, 16  ;;  %v303_v49 = vshrl.u32 %v272_v41, 16  ;;  %v302_v52 = vand.u32 65535, %v272_v41 }
  0xa3   :  { %v173_v50 = vadd.s32 536870912, %v172_v39  ;;  %v245_v57 = vshrl.u32 %v727_v36, %v244_v55  ;;  %v542_v61 = vand.u32 2139095040, %v846_v23  ;;  %v266_v7 = vsel %vm264_vm12, %v254_v15, 2102212464 }
  0xa4   :  { %v283_v53 = vmul.u32 %v281_v47, %v278_v44  ;;  %v284_v54 = vmul.u32 %v280_v40, %v279_v46  ;;  %v305_v33 = vmul.u32 %v303_v49, %v278_v44  ;;  %v282_v58 = vmul.u32 %v280_v40, %v278_v44 }
  0xa5   :  { %v174_v32 = vshrl.u32 %v173_v50, 30  ;;  %v285_v63 = vmul.u32 %v281_v47, %v279_v46  ;;  %v306_v1 = vmul.u32 %v302_v52, %v279_v46  ;;  %v304_v5 = vmul.u32 %v302_v52, %v278_v44 }
  0xa6   :  { %v286_v60 = vshll.u32 %v283_v53, 16  ;;  %v308_v2 = vshll.u32 %v305_v33, 16  ;;  %v288_v3 = vshll.u32 %v284_v54, 16  ;;  %v287_v11 = vshrl.u32 %v283_v53, 16 }
  0xa7   :  { %v175_v62 = vshll.u32 %v174_v32, 30  ;;  %v307_v20 = vmul.u32 %v303_v49, %v279_v46  ;;  %v310_v26 = vshll.u32 %v306_v1, 16  ;;  %v543_v34 = vshrl.u32 %v542_v61, 23 }
  0xa8   :  { %vm290_vm15 = vc.u32 %v282_v58, %v286_v60  ;;  %v292_v4 = vadd.s32 %v286_v60, %v282_v58  ;;  %vm312_vm1 = vc.u32 %v304_v5, %v308_v2  ;;  %v314_v17 = vadd.s32 %v308_v2, %v304_v5 }
  0xa9   :  { %v176_v6 = vsub.s32 %v172_v39, %v175_v62  ;;  %v291_v16 = vsel %vm290_vm15, 1, %v726_v0  ;;  %v313_v31 = vsel %vm312_vm1, 1, %v726_v0  ;;  %v265_v19 = vsel %vm261_vm11, %v245_v57, %v837_v8 }
  0xaa   :  { %v293_v55 = vadd.s32 %v291_v16, %v285_v63  ;;  %vm294_vm0 = vc.u32 %v292_v4, %v288_v3  ;;  %v315_v25 = vadd.s32 %v313_v31, %v307_v20  ;;  %vm316_vm3 = vc.u32 %v314_v17, %v310_v26 }
  0xab   :  { %vm177_vm2 = vcmp.lt.s32.totalorder %v176_v6, 0  ;;  %v178_v21 = vsub.s32 0, %v176_v6  ;;  %v295_v22 = vsel %vm294_vm0, 1, %v726_v0  ;;  %v198_v37 = vsub.s32 4, %v174_v32 }
  0xac   :  { %v297_v30 = vadd.s32 %v295_v22, %v293_v55  ;;  %v267_v39 = vsel %vm263_vm13, %v839_v10, %v266_v7  ;;  %v289_v41 = vshrl.u32 %v284_v54, 16  ;;  %v317_v43 = vsel %vm316_vm3, 1, %v726_v0 }
  0xad   :  { %v179_v18 = vsel %vm177_vm2, %v178_v21, %v176_v6  ;;  %v309_v46 = vshrl.u32 %v305_v33, 16  ;;  %v319_v40 = vadd.s32 %v317_v43, %v315_v25  ;;  %v712_v47 = vadd.s32 4294967169, %v543_v34 }
  0xae   :  { %v180_v15 = vclz %v179_v18  ;;  %v298_v35 = vadd.s32 %v297_v30, %v287_v11  ;;  %vm895_vm4 = vcmp.le.f32.partialorder %v74_v14, 0.7853982  ;;  %vm76_vm5 = vcmp.lt.s32.totalorder %v786_v13, 0 }
  0xaf   :  { %v539_v50 = vand.u32 2147483647, %v846_v23  ;;  %v168_v10 = vadd.s32 %v828_v59, %v842_v12  ;;  %v311_v52 = vshrl.u32 %v306_v1, 16  ;;  %v320_v53 = vadd.s32 %v319_v40, %v309_v46 }
  0xb0   :  { %v704_v44 = vadd.s32 4294967294, %v180_v15  ;;  %v900_v8 = vadd.s32 %v298_v35, %v289_v41  ;;  %v268_v33 = vsel %vm262_vm14, %v265_v19, %v267_v39  ;;  %v907_v14 = vadd.s32 %v314_v17, %v310_v26 }
  0xb1   :  { %v549_v57 = vadd.s32 1, %v712_v47  ;;  %v199_v61 = vsel %vm76_vm5, %v198_v37, %v174_v32  ;;  %v321_v62 = vadd.s32 %v320_v53, %v311_v52  ;;  %v546_v59 = vand.u32 8388607, %v539_v50 }
  0xb2   :  { %vm705_vm6 = vcmp.lt.s32.totalorder %v704_v44, 0  ;;  %vm324_vm7 = vc.u32 %v900_v8, %v907_v14  ;;  %v201_v3 = vsel %vm895_vm4, 0, %v199_v61  ;;  %v322_v4 = vmul.u32 %v851_v28, %v268_v33 }
  0xb3   :  { %v183_v54 = vsel %vm705_vm6, 0, %v704_v44  ;;  %vm550_vm8 = vcmp.gt.s32.totalorder %v549_v57, 0  ;;  %v325_v1 = vadd.s32 1, %v321_v62  ;;  %v218_v20 = vadd.s32 3, %v201_v3  ;;  %v63_v44 = vpop.permute.xlu0 %62 }
  0xb4   :  { %v184_v58 = vsub.s32 32, %v183_v54  ;;  %v188_v60 = vsub.s32 4294967266, %v183_v54  ;;  %v185_v63 = vshll.u32 %v176_v6, %v183_v54  ;;  %v551_v2 = vsel %vm550_vm8, %v549_v57, 0 }
  0xb5   :  { %v553_v5 = vand.u32 31, %v551_v2  ;;  %v326_v6 = vsel %vm324_vm7, %v325_v1, %v321_v62  ;;  %v547_v21 = vor.u32 8388608, %v546_v59  ;;  %v925_v15 = vshrl.u32 %v551_v2, 5 }
  0xb6   :  { %v186_v12 = vshrl.u32 %v168_v10, %v184_v58  ;;  %v189_v56 = vadd.s32 127, %v188_v60  ;;  %v327_v11 = vadd.s32 %v326_v6, %v322_v4  ;;  %v44_v46 = vmul.f32 %v783_v9, %v799_v29 }
  0xb7   :  { %v554_v16 = vsub.s32 32, %v553_v5  ;;  %v565_v31 = vshll.u32 %v730_v45, %v553_v5  ;;  %v556_v19 = vshll.u32 %v727_v36, %v553_v5  ;;  %v559_v39 = vshll.u32 %v728_v38, %v553_v5 }
  0xb8   :  { %v187_v32 = vor.u32 %v186_v12, %v185_v63  ;;  %v190_v7 = vshll.u32 %v189_v56, 23  ;;  %v328_v26 = vadd.s32 536870912, %v327_v11  ;;  %v562_v41 = vshll.u32 %v729_v42, %v553_v5 }
  0xb9   :  { %v557_v30 = vshrl.u32 %v728_v38, %v554_v16  ;;  %v560_v34 = vshrl.u32 %v729_v42, %v554_v16  ;;  %v563_v28 = vshrl.u32 %v730_v45, %v554_v16  ;;  %v566_v18 = vshrl.u32 %v731_v48, %v554_v16 }
  0xba   :  { %v191_v55 = vor.u32 4788187, %v190_v7  ;;  %v194_v22 = vcvt.s32.f32 %v187_v32  ;;  %v923_v25 = vshrl.u32 %v328_v26, 30  ;;  %v569_v35 = vshrl.u32 %v732_v51, %v554_v16 }
  0xbb   :  { %v567_v43 = vor.u32 %v566_v18, %v565_v31  ;;  %v933_v40 = vand.u32 3, %v218_v20  ;;  %v568_v10 = vshll.u32 %v731_v48, %v553_v5  ;;  %v937_v53 = vor.u32 %v557_v30, %v556_v19 }
  0xbc   :  { %v192_v17 = vand.u32 2147483647, %v191_v55  ;;  %v330_v47 = vshll.u32 %v923_v25, 30  ;;  %v939_v54 = vor.u32 %v560_v34, %v559_v39  ;;  %v941_v33 = vor.u32 %v563_v28, %v562_v41 }
  0xbd   :  { %v570_v58 = vor.u32 %v569_v35, %v568_v10  ;;  %vm574_vm9 = vcmp.lt.s32.totalorder %v925_v15, 4  ;;  %v946_v60 = vadd.f32 %v63_v44, %v44_v46  ;;  %vm571_vm10 = vcmp.lt.s32.totalorder %v925_v15, 1 }
  0xbe   :  { %v195_v37 = vmul.f32 %v194_v22, %v192_v17  ;;  %v943_v57 = vsub.s32 %v327_v11, %v330_v47  ;;  %v580_v29 = vsel %vm574_vm9, %v567_v43, 920167782  ;;  %v953_v61 = vshll.u32 %v547_v21, 8 }
  0xbf   :  { %vm573_vm12 = vcmp.lt.s32.totalorder %v925_v15, 3  ;;  %v579_v12 = vsel %vm571_vm10, %v937_v53, %v939_v54  ;;  %v583_v56 = vsel %vm571_vm10, %v939_v54, %v941_v33  ;;  %v323_v1 = vadd.s32 %v907_v14, %v900_v8 }
  0xc0   :  { %v196_v52 = vxor.u32 2147483648, %v195_v37  ;;  %vm332_vm11 = vcmp.lt.s32.totalorder %v943_v57, 0  ;;  %v333_v63 = vsub.s32 0, %v943_v57  ;;  %v581_v49 = vsel %vm573_vm12, %v941_v33, %v580_v29 }
  0xc1   :  { %vm572_vm13 = vcmp.lt.s32.totalorder %v925_v15, 2  ;;  %v584_v3 = vsel %vm574_vm9, %v570_v58, 1326507024  ;;  %v588_v14 = vand.u32 65535, %v953_v61  ;;  %v384_v11 = vand.u32 2147483647, %v946_v60 }
  0xc2   :  { %v197_v9 = vsel %vm76_vm5, %v196_v52, %v195_v37  ;;  %v334_v2 = vsel %vm332_vm11, %v333_v63, %v943_v57  ;;  %v585_v7 = vsel %vm573_vm12, %v567_v43, %v584_v3  ;;  %v986_v6 = vsel %vm572_vm13, %v579_v12, %v581_v49 }
  0xc3   :  { %v958_v62 = vsel %vm895_vm4, %v786_v13, %v197_v9  ;;  %v335_v32 = vclz %v334_v2  ;;  %v586_v8 = vsel %vm572_vm13, %v583_v56, %v585_v7  ;;  %vm231_vm14 = vcmp.lt.s32.totalorder %v793_v24, 0 }
  0xc4   :  { %v202_v59 = vmul.f32 %v958_v62, %v958_v62  ;;  %v590_v22 = vand.u32 65535, %v586_v8  ;;  %v994_v26 = vshrl.u32 %v727_v36, %v554_v16  ;;  %v589_v30 = vshrl.u32 %v953_v61, 16 }
  0xc5   :  { %v707_v21 = vadd.s32 4294967294, %v335_v32  ;;  %v591_v31 = vshrl.u32 %v586_v8, 16  ;;  %v387_v17 = vand.u32 2139095040, %v946_v60  ;;  %v353_v18 = vsub.s32 4, %v923_v25 }
  0xc6   :  { %v203_v4 = vmul.f32 -0.001358992, %v202_v59  ;;  %v210_v5 = vmul.f32 -0.00019511016, %v202_v59  ;;  %v999_v37 = vmul.u32 %v590_v22, %v589_v30  ;;  %v612_v39 = vand.u32 65535, %v986_v6 }
  0xc7   :  { %vm708_vm15 = vcmp.lt.s32.totalorder %v707_v21, 0  ;;  %v593_v35 = vmul.u32 %v591_v31, %v588_v14  ;;  %vm224_vm0 = vcmp.eq.s32.totalorder %v933_v40, 2  ;;  %v613_v44 = vshrl.u32 %v986_v6, 16 }
  0xc8   :  { %v204_v55 = vadd.f32 0.041655596, %v203_v4  ;;  %v211_v20 = vadd.f32 0.008332121, %v210_v5  ;;  %v338_v19 = vsel %vm708_vm15, 0, %v707_v21  ;;  %vm221_vm1 = vcmp.eq.s32.totalorder %v933_v40, 0 }
  0xc9   :  { %v339_v16 = vsub.s32 32, %v338_v19  ;;  %v343_v46 = vsub.s32 4294967266, %v338_v19  ;;  %v592_v47 = vmul.u32 %v590_v22, %v588_v14  ;;  %v595_v10 = vmul.u32 %v591_v31, %v589_v30 }
  0xca   :  { %v205_v34 = vmul.f32 %v204_v55, %v202_v59  ;;  %v212_v28 = vmul.f32 %v211_v20, %v202_v59  ;;  %v596_v52 = vshll.u32 %v593_v35, 16  ;;  %vm694_vm2 = vcmask 64512  }
  0xcb   :  { %vm220_vm3 = vcmp.lt.s32.totalorder %v933_v40, 2  ;;  %v340_v29 = vshll.u32 %v943_v57, %v338_v19  ;;  %v341_v63 = vshrl.u32 %v323_v1, %v339_v16  ;;  %vm217_vm4 = vweird.f32 %v786_v13 }
  0xcc   :  { %v206_v41 = vadd.f32 -0.4999988, %v205_v34  ;;  %v213_v43 = vadd.f32 -0.16666654, %v212_v28  ;;  %v344_v12 = vadd.s32 127, %v343_v46  ;;  %v598_v49 = vshll.u32 %v999_v37, 16 }
  0xcd   :  { %vm600_vm5 = vc.u32 %v592_v47, %v596_v52  ;;  %v602_v56 = vadd.s32 %v596_v52, %v592_v47  ;;  %v342_v4 = vor.u32 %v341_v63, %v340_v29  ;;  %vm1012_vm6 = vcmp.le.f32.partialorder %v229_v27, 0.7853982 }
  0xce   :  { %v207_v58 = vmul.f32 %v206_v41, %v202_v59  ;;  %v214_v9 = vmul.f32 %v213_v43, %v202_v59  ;;  %v601_v5 = vsel %vm600_vm5, 1, %v726_v0  ;;  %v345_v57 = vshll.u32 %v344_v12, 23 }
  0xcf   :  { %v603_v1 = vadd.s32 %v601_v5, %v595_v10  ;;  %vm604_vm7 = vc.u32 %v602_v56, %v598_v49  ;;  %v615_v32 = vmul.u32 %v613_v44, %v588_v14  ;;  %v354_v8 = vsel %vm231_vm14, %v353_v18, %v923_v25 }
  0xd0   :  { %v208_v2 = vadd.f32 1.0, %v207_v58  ;;  %v215_v3 = vadd.f32 1.0, %v214_v9  ;;  %v605_v55 = vsel %vm604_vm7, 1, %v726_v0  ;;  %v346_v20 = vor.u32 4788187, %v345_v57 }
  0xd1   :  { %v597_v21 = vshrl.u32 %v593_v35, 16  ;;  %v607_v22 = vadd.s32 %v605_v55, %v603_v1  ;;  %v616_v27 = vmul.u32 %v612_v39, %v589_v30  ;;  %v349_v34 = vcvt.s32.f32 %v342_v4 }
  0xd2   :  { %v216_v7 = vmul.f32 %v215_v3, %v958_v62  ;;  %v225_v6 = vxor.u32 2147483648, %v208_v2  ;;  %v614_v28 = vmul.u32 %v612_v39, %v588_v14  ;;  %v618_v19 = vshll.u32 %v615_v32, 16 }
  0xd3   :  { %v347_v43 = vand.u32 2147483647, %v346_v20  ;;  %v617_v62 = vmul.u32 %v613_v44, %v589_v30  ;;  %v620_v16 = vshll.u32 %v616_v27, 16  ;;  %v388_v18 = vshrl.u32 %v387_v17, 23 }
  0xd4   :  { %v222_v31 = vxor.u32 2147483648, %v216_v7  ;;  %v226_v41 = vsel %vm224_vm0, %v225_v6, %v216_v7  ;;  %vm622_vm8 = vc.u32 %v614_v28, %v618_v19  ;;  %v624_v25 = vadd.s32 %v618_v19, %v614_v28 }
  0xd5   :  { %v350_v47 = vmul.f32 %v349_v34, %v347_v43  ;;  %v608_v10 = vadd.s32 %v607_v22, %v597_v21  ;;  %v623_v14 = vsel %vm622_vm8, 1, %v726_v0  ;;  %v576_v30 = vsel %vm574_vm9, %v941_v33, 2102212464 }
  0xd6   :  { %v223_v46 = vsel %vm221_vm1, %v208_v2, %v222_v31  ;;  %v625_v44 = vadd.s32 %v623_v14, %v617_v62  ;;  %vm626_vm11 = vc.u32 %v624_v25, %v620_v16  ;;  %v599_v17 = vshrl.u32 %v999_v37, 16 }
  0xd7   :  { %v227_v35 = vsel %vm220_vm3, %v223_v46, %v226_v41  ;;  %v351_v40 = vxor.u32 2147483648, %v350_v47  ;;  %v627_v52 = vsel %vm626_vm11, 1, %v726_v0  ;;  %v709_v58 = vadd.s32 4294967169, %v388_v18 }
  0xd8   :  { %v228_v39 = vsel %vm217_vm4, nan, %v227_v35  ;;  %v356_v13 = vsel %vm1012_vm6, 0, %v354_v8  ;;  %v575_v33 = vsel %vm571_vm10, %v994_v26, %v937_v53  ;;  %v619_v9 = vshrl.u32 %v615_v32, 16 }
  0xd9   :  { %695 = vst.msk [vmem:[%s1181_s3] sm:$0xff] %vm694_vm2, %v228_v39  ;;  %v629_v29 = vadd.s32 %v627_v52, %v625_v44  ;;  %v352_v63 = vsel %vm231_vm14, %v351_v40, %v350_v47  ;;  %v577_v37 = vsel %vm573_vm12, %v939_v54, %v576_v30  ;;  %v1050_v12 = vadd.s32 %v608_v10, %v599_v17 }
  0xda   :  { %v394_v49 = vadd.s32 1, %v709_v58  ;;  %v355_v56 = vsel %vm1012_vm6, %v793_v24, %v352_v63  ;;  %v621_v2 = vshrl.u32 %v616_v27, 16  ;;  %v1055_v53 = vadd.s32 %v624_v25, %v620_v16 }
  0xdb   :  { %v630_v3 = vadd.s32 %v629_v29, %v619_v9  ;;  %v357_v4 = vmul.f32 %v355_v56, %v355_v56  ;;  %v391_v26 = vand.u32 8388607, %v384_v11  ;;  %v373_v5 = vadd.s32 3, %v356_v13 }
  0xdc   :  { %vm395_vm9 = vcmp.gt.s32.totalorder %v394_v49, 0  ;;  %v578_v54 = vsel %vm572_vm13, %v575_v33, %v577_v37  ;;  %vm634_vm10 = vc.u32 %v1050_v12, %v1055_v53  ;;  %vm372_vm13 = vweird.f32 %v793_v24 }
  0xdd   :  { %v631_v57 = vadd.s32 %v630_v3, %v621_v2  ;;  %v396_v1 = vsel %vm395_vm9, %v394_v49, 0  ;;  %v358_v32 = vmul.f32 -0.001358992, %v357_v4  ;;  %v365_v7 = vmul.f32 -0.00019511016, %v357_v4 }
  0xde   :  { %v398_v59 = vand.u32 31, %v396_v1  ;;  %v632_v20 = vmul.u32 %v953_v61, %v578_v54  ;;  %v374_v22 = vand.u32 3, %v373_v5  ;;  %v392_v28 = vor.u32 8388608, %v391_v26 }
  0xdf   :  { %v635_v6 = vadd.s32 1, %v631_v57  ;;  %v359_v8 = vadd.f32 0.041655596, %v358_v32  ;;  %v366_v55 = vadd.f32 0.008332121, %v365_v7  ;;  %v1066_v19 = vshrl.u32 %v396_v1, 5 }
  0xe0   :  { %v1064_v21 = vsub.s32 32, %v398_v59  ;;  %v401_v18 = vshll.u32 %v727_v36, %v398_v59  ;;  %v404_v35 = vshll.u32 %v728_v38, %v398_v59  ;;  %v407_v47 = vshll.u32 %v729_v42, %v398_v59 }
  0xe1   :  { %v636_v27 = vsel %vm634_vm10, %v635_v6, %v631_v57  ;;  %v360_v31 = vmul.f32 %v359_v8, %v357_v4  ;;  %v367_v15 = vmul.f32 %v366_v55, %v357_v4  ;;  %v410_v10 = vshll.u32 %v730_v45, %v398_v59 }
  0xe2   :  { %v637_v34 = vadd.s32 %v636_v27, %v632_v20  ;;  %v402_v41 = vshrl.u32 %v728_v38, %v1064_v21  ;;  %v405_v43 = vshrl.u32 %v729_v42, %v1064_v21  ;;  %v411_v62 = vshrl.u32 %v731_v48, %v1064_v21 }
  0xe3   :  { %v361_v61 = vadd.f32 -0.4999988, %v360_v31  ;;  %v368_v16 = vadd.f32 -0.16666654, %v367_v15  ;;  %v408_v25 = vshrl.u32 %v730_v45, %v1064_v21  ;;  %vm375_vm12 = vcmp.lt.s32.totalorder %v374_v22, 2 }
  0xe4   :  { %v638_v46 = vadd.s32 536870912, %v637_v34  ;;  %v414_v44 = vshrl.u32 %v732_v51, %v1064_v21  ;;  %v1085_v40 = vor.u32 %v402_v41, %v401_v18  ;;  %v1087_v17 = vor.u32 %v405_v43, %v404_v35 }
  0xe5   :  { %v362_v14 = vmul.f32 %v361_v61, %v357_v4  ;;  %v369_v39 = vmul.f32 %v368_v16, %v357_v4  ;;  %v412_v52 = vor.u32 %v411_v62, %v410_v10  ;;  %v413_v38 = vshll.u32 %v731_v48, %v398_v59 }
  0xe6   :  { %v1080_v30 = vshrl.u32 %v638_v46, 30  ;;  %v1091_v13 = vor.u32 %v408_v25, %v407_v47  ;;  %vm376_vm14 = vcmp.eq.s32.totalorder %v374_v22, 0  ;;  %vm379_vm15 = vcmp.eq.s32.totalorder %v374_v22, 2 }
  0xe7   :  { %v363_v42 = vadd.f32 1.0, %v362_v14  ;;  %v370_v58 = vadd.f32 1.0, %v369_v39  ;;  %v415_v33 = vor.u32 %v414_v44, %v413_v38  ;;  %vm416_vm0 = vcmp.lt.s32.totalorder %v1066_v19, 1 }
  0xe8   :  { %v640_v45 = vshll.u32 %v1080_v30, 30  ;;  %vm419_vm1 = vcmp.lt.s32.totalorder %v1066_v19, 4  ;;  %vm418_vm3 = vcmp.lt.s32.totalorder %v1066_v19, 3  ;;  %v424_v48 = vsel %vm416_vm0, %v1085_v40, %v1087_v17 }
  0xe9   :  { %v371_v51 = vmul.f32 %v370_v58, %v355_v56  ;;  %v380_v9 = vxor.u32 2147483648, %v363_v42  ;;  %v425_v63 = vsel %vm419_vm1, %v412_v52, 920167782  ;;  %v1102_v37 = vshll.u32 %v392_v28, 8 }
  0xea   :  { %v641_v29 = vsub.s32 %v637_v34, %v640_v45  ;;  %v428_v56 = vsel %vm416_vm0, %v1087_v17, %v1091_v13  ;;  %vm417_vm5 = vcmp.lt.s32.totalorder %v1066_v19, 2  ;;  %v426_v4 = vsel %vm418_vm3, %v1091_v13, %v425_v63 }
  0xeb   :  { %v377_v49 = vxor.u32 2147483648, %v371_v51  ;;  %v381_v3 = vsel %vm379_vm15, %v380_v9, %v371_v51  ;;  %v429_v26 = vsel %vm419_vm1, %v415_v33, 1326507024  ;;  %v427_v57 = vsel %vm417_vm5, %v424_v48, %v426_v4 }
  0xec   :  { %vm642_vm4 = vcmp.lt.s32.totalorder %v641_v29, 0  ;;  %v643_v2 = vsub.s32 0, %v641_v29  ;;  %v430_v1 = vsel %vm418_vm3, %v412_v52, %v429_v26  ;;  %v433_v6 = vand.u32 65535, %v1102_v37 }
  0xed   :  { %v378_v5 = vsel %vm376_vm14, %v363_v42, %v377_v49  ;;  %v431_v59 = vsel %vm417_vm5, %v428_v56, %v430_v1  ;;  %v434_v55 = vshrl.u32 %v1102_v37, 16  ;;  %v457_v31 = vand.u32 65535, %v427_v57 }
  0xee   :  { %v644_v54 = vsel %vm642_vm4, %v643_v2, %v641_v29  ;;  %v382_v32 = vsel %vm375_vm12, %v378_v5, %v381_v3  ;;  %v435_v20 = vand.u32 65535, %v431_v59  ;;  %v436_v27 = vshrl.u32 %v431_v59, 16 }
  0xef   :  { %v645_v7 = vclz %v644_v54  ;;  %v383_v8 = vsel %vm372_vm13, nan, %v382_v32  ;;  %v633_v28 = vadd.s32 %v1055_v53, %v1050_v12  ;;  %v458_v41 = vshrl.u32 %v427_v57, 16 }
  0xf0   :  { %696 = vst.msk [vmem:[%s1181_s3 + $0x8] sm:$0xff] %vm694_vm2, %v383_v8  ;;  %v438_v15 = vmul.u32 %v436_v27, %v433_v6  ;;  %v439_v34 = vmul.u32 %v435_v20, %v434_v55  ;;  %v437_v43 = vmul.u32 %v435_v20, %v433_v6  ;;  %v440_v62 = vmul.u32 %v436_v27, %v434_v55 }
  0xf1   :  { %v713_v22 = vadd.s32 4294967294, %v645_v7  ;;  %v459_v25 = vmul.u32 %v457_v31, %v433_v6  ;;  %v461_v18 = vmul.u32 %v457_v31, %v434_v55  ;;  %v460_v10 = vmul.u32 %v458_v41, %v433_v6 }
  0xf2   :  { %v441_v61 = vshll.u32 %v438_v15, 16  ;;  %v443_v35 = vshll.u32 %v439_v34, 16  ;;  %v442_v12 = vshrl.u32 %v438_v15, 16  ;;  %v462_v33 = vmul.u32 %v458_v41, %v434_v55 }
  0xf3   :  { %vm714_vm6 = vcmp.lt.s32.totalorder %v713_v22, 0  ;;  %v463_v38 = vshll.u32 %v460_v10, 16  ;;  %v465_v9 = vshll.u32 %v461_v18, 16  ;;  %v421_v2 = vsel %vm419_vm1, %v1091_v13, 2102212464 }
  0xf4   :  { %v648_v24 = vsel %vm714_vm6, 0, %v713_v22  ;;  %vm445_vm7 = vc.u32 %v437_v43, %v441_v61  ;;  %v447_v47 = vadd.s32 %v441_v61, %v437_v43  ;;  %v444_v5 = vshrl.u32 %v439_v34, 16 }
  0xf5   :  { %v649_v16 = vsub.s32 32, %v648_v24  ;;  %v653_v46 = vsub.s32 4294967266, %v648_v24  ;;  %v650_v14 = vshll.u32 %v641_v29, %v648_v24  ;;  %v446_v52 = vsel %vm445_vm7, 1, %v726_v0 }
  0xf6   :  { %v448_v53 = vadd.s32 %v446_v52, %v440_v62  ;;  %vm449_vm8 = vc.u32 %v447_v47, %v443_v35  ;;  %vm467_vm11 = vc.u32 %v459_v25, %v463_v38  ;;  %v469_v48 = vadd.s32 %v463_v38, %v459_v25 }
  0xf7   :  { %v651_v39 = vshrl.u32 %v633_v28, %v649_v16  ;;  %v654_v44 = vadd.s32 127, %v653_v46  ;;  %v450_v45 = vsel %vm449_vm8, 1, %v726_v0  ;;  %v400_v29 = vshrl.u32 %v727_v36, %v1064_v21 }
  0xf8   :  { %v452_v51 = vadd.s32 %v450_v45, %v448_v53  ;;  %v468_v49 = vsel %vm467_vm11, 1, %v726_v0  ;;  %vm471_vm9 = vc.u32 %v469_v48, %v465_v9  ;;  %v464_v57 = vshrl.u32 %v460_v10, 16 }
  0xf9   :  { %v652_v42 = vor.u32 %v651_v39, %v650_v14  ;;  %v655_v58 = vshll.u32 %v654_v44, 23  ;;  %v470_v3 = vadd.s32 %v468_v49, %v462_v33  ;;  %v472_v54 = vsel %vm471_vm9, 1, %v726_v0 }
  0xfa   :  { %v453_v56 = vadd.s32 %v452_v51, %v442_v12  ;;  %v420_v36 = vsel %vm416_vm0, %v400_v29, %v1085_v40  ;;  %v422_v21 = vsel %vm418_vm3, %v1087_v17, %v421_v2  ;;  %v466_v7 = vshrl.u32 %v461_v18, 16 }
  0xfb   :  { %v656_v63 = vor.u32 4788187, %v655_v58  ;;  %v659_v26 = vcvt.s32.f32 %v652_v42  ;;  %v474_v1 = vadd.s32 %v472_v54, %v470_v3  ;;  %v473_v8 = vadd.s32 %v469_v48, %v465_v9 }
  0xfc   :  { %v454_v13 = vadd.s32 %v453_v56, %v444_v5  ;;  %vm541_vm10 = vcmp.lt.s32.totalorder %v846_v23, 0  ;;  %v423_v0 = vsel %vm417_vm5, %v420_v36, %v422_v21  ;;  %vm1152_vm12 = vcmp.le.f32.partialorder %v539_v50, 0.7853982 }
  0xfd   :  { %v657_v4 = vand.u32 2147483647, %v656_v63  ;;  %v475_v59 = vadd.s32 %v474_v1, %v464_v57  ;;  %v663_v17 = vsub.s32 4, %v1080_v30  ;;  %v477_v19 = vmul.u32 %v1102_v37, %v423_v0 }
  0xfe   :  { %vm479_vm13 = vc.u32 %v454_v13, %v473_v8  ;;  %vm682_vm3 = vweird.f32 %v846_v23  ;;  %v478_v49 = vadd.s32 %v473_v8, %v454_v13  ;;  %vm386_vm5 = vcmp.lt.s32.totalorder %v946_v60, 0 }
  0xff   :  { %v660_v32 = vmul.f32 %v659_v26, %v657_v4  ;;  %v476_v55 = vadd.s32 %v475_v59, %v466_v7  ;;  %v664_v50 = vsel %vm541_vm10, %v663_v17, %v1080_v30  ;;  %vm385_vm6 = vcmp.le.f32.partialorder %v384_v11, 0.7853982 }
 0x100   :  { %v666_v61 = vsel %vm1152_vm12, 0, %v664_v50  ;;  %vm527_vm9 = vweird.f32 %v946_v60 }
 0x101   :  { %v661_v6 = vxor.u32 2147483648, %v660_v32  ;;  %v480_v22 = vadd.s32 1, %v476_v55  ;;  %v683_v10 = vadd.s32 3, %v666_v61 }
 0x103   :  { %v662_v40 = vsel %vm541_vm10, %v661_v6, %v660_v32  ;;  %v481_v15 = vsel %vm479_vm13, %v480_v22, %v476_v55  ;;  %v684_v12 = vand.u32 3, %v683_v10 }
 0x104   :  { %v665_v27 = vsel %vm1152_vm12, %v846_v23, %v662_v40  ;;  %v482_v41 = vadd.s32 %v481_v15, %v477_v19 }
 0x105   :  { %v667_v31 = vmul.f32 %v665_v27, %v665_v27  ;;  %vm686_vm15 = vcmp.eq.s32.totalorder %v684_v12, 0  ;;  %vm689_vm0 = vcmp.eq.s32.totalorder %v684_v12, 2  ;;  %vm685_vm1 = vcmp.lt.s32.totalorder %v684_v12, 2 }
 0x106   :  { %v483_v62 = vadd.s32 536870912, %v482_v41 }
 0x107   :  { %v668_v34 = vmul.f32 -0.001358992, %v667_v31  ;;  %v675_v28 = vmul.f32 -0.00019511016, %v667_v31 }
 0x108   :  { %v484_v25 = vshrl.u32 %v483_v62, 30 }
 0x109   :  { %v669_v24 = vadd.f32 0.041655596, %v668_v34  ;;  %v676_v43 = vadd.f32 0.008332121, %v675_v28 }
 0x10a   :  { %v485_v47 = vshll.u32 %v484_v25, 30  ;;  %v508_v7 = vsub.s32 4, %v484_v25 }
 0x10b   :  { %v670_v16 = vmul.f32 %v669_v24, %v667_v31  ;;  %v677_v46 = vmul.f32 %v676_v43, %v667_v31 }
 0x10c   :  { %v486_v39 = vsub.s32 %v482_v41, %v485_v47  ;;  %v509_v0 = vsel %vm386_vm5, %v508_v7, %v484_v25 }
 0x10d   :  { %v671_v18 = vadd.f32 -0.4999988, %v670_v16  ;;  %v678_v35 = vadd.f32 -0.16666654, %v677_v46  ;;  %v511_v40 = vsel %vm385_vm6, 0, %v509_v0 }
 0x10e   :  { %vm487_vm14 = vcmp.lt.s32.totalorder %v486_v39, 0  ;;  %v488_v30 = vsub.s32 0, %v486_v39  ;;  %v528_v19 = vadd.s32 3, %v511_v40 }
 0x10f   :  { %v672_v37 = vmul.f32 %v671_v18, %v667_v31  ;;  %v679_v14 = vmul.f32 %v678_v35, %v667_v31 }
 0x110   :  { %v489_v42 = vsel %vm487_vm14, %v488_v30, %v486_v39  ;;  %v529_v41 = vand.u32 3, %v528_v19 }
 0x111   :  { %v673_v44 = vadd.f32 1.0, %v672_v37  ;;  %v680_v52 = vadd.f32 1.0, %v679_v14  ;;  %v490_v58 = vclz %v489_v42 }
 0x112   :  { %vm531_vm7 = vcmp.eq.s32.totalorder %v529_v41, 0  ;;  %vm534_vm8 = vcmp.eq.s32.totalorder %v529_v41, 2  ;;  %vm530_vm11 = vcmp.lt.s32.totalorder %v529_v41, 2 }
 0x113   :  { %v681_v53 = vmul.f32 %v680_v52, %v665_v27  ;;  %v690_v38 = vxor.u32 2147483648, %v673_v44  ;;  %v710_v33 = vadd.s32 4294967294, %v490_v58 }
 0x115   :  { %v687_v45 = vxor.u32 2147483648, %v681_v53  ;;  %v691_v9 = vsel %vm689_vm0, %v690_v38, %v681_v53  ;;  %vm711_vm4 = vcmp.lt.s32.totalorder %v710_v33, 0 }
 0x116   :  { %v493_v29 = vsel %vm711_vm4, 0, %v710_v33 }
 0x117   :  { %v688_v51 = vsel %vm686_vm15, %v673_v44, %v687_v45  ;;  %v494_v2 = vsub.s32 32, %v493_v29  ;;  %v498_v56 = vsub.s32 4294967266, %v493_v29  ;;  %v495_v3 = vshll.u32 %v486_v39, %v493_v29 }
 0x118   :  { %v692_v48 = vsel %vm685_vm1, %v688_v51, %v691_v9 }
 0x119   :  { %v693_v63 = vsel %vm682_vm3, nan, %v692_v48  ;;  %v496_v4 = vshrl.u32 %v478_v49, %v494_v2  ;;  %v499_v26 = vadd.s32 127, %v498_v56 }
 0x11a   :  { %698 = vst.msk [vmem:[%s1181_s3 + $0x18] sm:$0xff] %vm694_vm2, %v693_v63 }
 0x11b   :  { %v497_v5 = vor.u32 %v496_v4, %v495_v3  ;;  %v500_v54 = vshll.u32 %v499_v26, 23 }
 0x11d   :  { %v501_v57 = vor.u32 4788187, %v500_v54  ;;  %v504_v23 = vcvt.s32.f32 %v497_v5 }
 0x11f   :  { %v502_v1 = vand.u32 2147483647, %v501_v57 }
 0x121   :  { %v505_v32 = vmul.f32 %v504_v23, %v502_v1 }
 0x123   :  { %v506_v36 = vxor.u32 2147483648, %v505_v32 }
 0x125   :  { %v507_v21 = vsel %vm386_vm5, %v506_v36, %v505_v32 }
 0x126   :  { %v510_v13 = vsel %vm385_vm6, %v946_v60, %v507_v21 }
 0x127   :  { %v512_v59 = vmul.f32 %v510_v13, %v510_v13 }
 0x129   :  { %v513_v6 = vmul.f32 -0.001358992, %v512_v59  ;;  %v520_v8 = vmul.f32 -0.00019511016, %v512_v59 }
 0x12b   :  { %v514_v55 = vadd.f32 0.041655596, %v513_v6  ;;  %v521_v20 = vadd.f32 0.008332121, %v520_v8 }
 0x12d   :  { %v515_v17 = vmul.f32 %v514_v55, %v512_v59  ;;  %v522_v27 = vmul.f32 %v521_v20, %v512_v59 }
 0x12f   :  { %v516_v22 = vadd.f32 -0.4999988, %v515_v17  ;;  %v523_v31 = vadd.f32 -0.16666654, %v522_v27 }
 0x131   :  { %v517_v15 = vmul.f32 %v516_v22, %v512_v59  ;;  %v524_v34 = vmul.f32 %v523_v31, %v512_v59 }
 0x133   :  { %v518_v28 = vadd.f32 1.0, %v517_v15  ;;  %v525_v11 = vadd.f32 1.0, %v524_v34 }
 0x135   :  { %v526_v50 = vmul.f32 %v525_v11, %v510_v13  ;;  %v535_v24 = vxor.u32 2147483648, %v518_v28 }
 0x137   :  { %v532_v43 = vxor.u32 2147483648, %v526_v50  ;;  %v536_v61 = vsel %vm534_vm8, %v535_v24, %v526_v50 }
 0x139   :  { %v533_v62 = vsel %vm531_vm7, %v518_v28, %v532_v43 }
 0x13a   :  { %v537_v16 = vsel %vm530_vm11, %v533_v62, %v536_v61 }
 0x13b   :  { %v538_v46 = vsel %vm527_vm9, nan, %v537_v16 }
 0x13c   :  { %697 = vst.msk [vmem:[%s1181_s3 + $0x10] sm:$0xff] %vm694_vm2, %v538_v46 }

</bundles_post_ra>
